<compile_context>
chip_gen: v5e
topology: v5e:2x2
jax: 0.10.0
libtpu: 0.0.40
codegen_flags: <defaults>
</compile_context>

<pallas_src>
import jax
import jax.numpy as jnp
import numpy as np
from jax import lax
from jax.experimental import pallas as pl
from jax.experimental.pallas import tpu as pltpu


# ------------------------------ kernels ---------------------------------------

def _pool_mxu_kernel(x_ref, b1_ref, b2_ref, o_ref):
    # x_ref: (TM, N), b1/b2_ref: (N, TN) one-hot, o_ref: (TM, TN)
    x = x_ref[...]
    y1 = jnp.dot(x, b1_ref[...], preferred_element_type=jnp.float32,
                 precision=lax.Precision.HIGHEST)
    y2 = jnp.dot(x, b2_ref[...], preferred_element_type=jnp.float32,
                 precision=lax.Precision.HIGHEST)
    # 0-clamp reproduces the implicit zero terms of max_n(x*B) (valid for N >= 3).
    o_ref[...] = jnp.maximum(jnp.maximum(y1, y2), 0.0).astype(o_ref.dtype)


_SUB_M = 128    # sub-accumulator rows
_SUB_N = 256    # sub-accumulator lanes: 128x256 f32 = 32 vregs -> register-resident
_UNROLL = 8     # node-loop unroll factor for very large N
_STATIC_N = 512 # fully unroll the (trace-time static) node loop up to this size


def _pool_general_kernel(x_ref, b_ref, o_ref):
    # x_ref: (TM, N) row tile, b_ref: (N, TN) column tile, o_ref: (TM, TN)
    tm, n_nodes = x_ref.shape
    tn = b_ref.shape[1]

    for i0 in range(0, tm, _SUB_M):
        sm = min(_SUB_M, tm - i0)
        for j0 in range(0, tn, _SUB_N):
            sn = min(_SUB_N, tn - j0)

            def term(n, i0=i0, sm=sm, j0=j0, sn=sn):
                return (x_ref[pl.ds(i0, sm), pl.ds(n, 1)]
                        * b_ref[pl.ds(n, 1), pl.ds(j0, sn)])

            acc = term(0)                                   # n = 0 term, (sm, sn)
            if n_nodes <= _STATIC_N:
                # Fully unrolled at trace time -> static lane/sublane offsets,
                # long straight-line window for the LLO scheduler.
                for n in range(1, n_nodes):
                    acc = jnp.maximum(acc, term(n))
            else:
                # TODO(synk): for extremely large N, a grid-axis reduction over
                # node blocks would avoid the dynamic lane slice below.
                n_blocks = n_nodes // _UNROLL

                def body(nb, a, i0=i0, sm=sm, j0=j0, sn=sn):
                    base = pl.multiple_of(nb * _UNROLL, _UNROLL)
                    xk = x_ref[pl.ds(i0, sm), pl.ds(base, _UNROLL)]   # (sm, UNROLL)
                    bk = b_ref[pl.ds(base, _UNROLL), pl.ds(j0, sn)]   # (UNROLL, sn)
                    for k in range(_UNROLL):                          # static offsets
                        a = jnp.maximum(a, xk[:, k:k + 1] * bk[k:k + 1, :])
                    return a

                acc = lax.fori_loop(0, n_blocks, body, acc)           # n=0 repeat is
                for n in range(n_blocks * _UNROLL, n_nodes):          # harmless (max)
                    acc = jnp.maximum(acc, term(n))

            o_ref[pl.ds(i0, sm), pl.ds(j0, sn)] = acc.astype(o_ref.dtype)


# ------------------------------ wrapper ----------------------------------------

def _cdiv(a, b):
    return -(-a // b)


def _round_up(a, m):
    return _cdiv(a, m) * m


def _balanced_tile(total, cap, granule):
    """Tile size <= ~cap, multiple of granule, padding spread across all tiles."""
    n_tiles = max(1, _cdiv(total, cap))
    return _round_up(_cdiv(total, n_tiles), granule)


def pool_clique_to_line(x, incidence, *, row_tile=512, m_tile=2048,
                        force_general=False):
    """x: (B, F, N), incidence: (N, M) -> (B, F, M);  y = max_n(x[..., n] * B[n, :])."""
    Bsz, F, N = x.shape
    N2, M = incidence.shape
    assert N == N2, "x.shape[2] must equal incidence.shape[0]"

    dtype = x.dtype
    inc = incidence.astype(dtype)
    rows = Bsz * F
    x2d = x.reshape(rows, N)

    # ---- path selection (needs a concrete incidence; falls back under tracing) ----
    use_mxu = False
    if not force_general and N >= 3:
        try:
            use_mxu = (bool(jnp.all((inc == 0.0) | (inc == 1.0)))
                       and bool(jnp.all(jnp.sum(inc, axis=0) == 2.0)))
        except jax.errors.ConcretizationTypeError:
            use_mxu = False

    n_inc_operands = 2 if use_mxu else 1
    itemsize = jnp.dtype(dtype).itemsize

    # ---- balanced, budget-aware tiling ----
    tm = _balanced_tile(rows, row_tile, 8)

    def footprint(tm_, tn_):
        # double-buffered x tile + incidence operand tile(s) + output tile
        return 2 * (tm_ * N + n_inc_operands * N * tn_ + tm_ * tn_) * itemsize

    budget = 24 << 20
    m_pad_full = _round_up(M, 128)
    if footprint(tm, m_pad_full) <= budget:
        tn = m_pad_full            # single M tile: incidence DMA'd once, lane-dense vst
    else:
        tn = _balanced_tile(M, m_tile, 128)
        while tn > 512 and footprint(tm, tn) > budget:
            tn = _round_up(tn // 2, 128)
    while tm > 128 and footprint(tm, tn) > budget:
        tm = _round_up(tm // 2, 8)
    # TODO(synk): tile the node axis as well when N is so large that one (tm, N)
    # x-slab no longer fits VMEM.

    rows_pad = _round_up(rows, tm)
    m_pad = _round_up(M, tn)

    # v7x has 2 TensorCores: split a 1x1 grid when the problem allows it.
    if rows_pad // tm == 1 and m_pad // tn == 1:
        if rows >= 16:
            tm = _round_up(_cdiv(rows, 2), 8)
            rows_pad = _round_up(rows, tm)
        elif m_pad >= 256:
            tn = _round_up(_cdiv(M, 2), 128)
            m_pad = _round_up(M, tn)

    grid = (rows_pad // tm, m_pad // tn)
    vmem_limit = int(min(max(2 * footprint(tm, tn), 32 << 20), 40 << 20))

    if rows_pad != rows:
        # Zero-padded rows produce 0 under both paths and are sliced off below.
        x2d = jnp.pad(x2d, ((0, rows_pad - rows), (0, 0)))

    def pad_cols(a):
        return a if m_pad == M else jnp.pad(a, ((0, 0), (0, m_pad - M)))

    x_spec = pl.BlockSpec((tm, N), lambda i, j: (i, 0))
    b_spec = pl.BlockSpec((N, tn), lambda i, j: (0, j))
    o_spec = pl.BlockSpec((tm, tn), lambda i, j: (i, j))
    compiler_params = pltpu.CompilerParams(
        dimension_semantics=("parallel", "parallel"),
        vmem_limit_bytes=vmem_limit,
    )
    out_shape = jax.ShapeDtypeStruct((rows_pad, m_pad), dtype)

    if use_mxu:
        # One-hot decomposition: B1 marks the first 1 of each column, B2 the second.
        mask = inc > 0.5
        csum = jnp.cumsum(mask.astype(jnp.int32), axis=0)
        b1 = pad_cols(jnp.where(mask & (csum == 1), 1.0, 0.0).astype(dtype))
        b2 = pad_cols(jnp.where(mask & (csum == 2), 1.0, 0.0).astype(dtype))
        out2d = pl.pallas_call(
            _pool_mxu_kernel,
            out_shape=out_shape,
            grid_spec=pltpu.PrefetchScalarGridSpec(
                num_scalar_prefetch=0, grid=grid,
                in_specs=[x_spec, b_spec, b_spec],
                out_specs=o_spec),
            compiler_params=compiler_params,
        )(x2d, b1, b2)
    else:
        out2d = pl.pallas_call(
            _pool_general_kernel,
            out_shape=out_shape,
            grid_spec=pltpu.PrefetchScalarGridSpec(
                num_scalar_prefetch=0, grid=grid,
                in_specs=[x_spec, b_spec],
                out_specs=o_spec),
            compiler_params=compiler_params,
        )(x2d, pad_cols(inc))

    return out2d[:rows, :M].reshape(Bsz, F, M)


# ------------------------------ test helpers -----------------------------------

def make_clique_incidence(n_nodes, dtype=jnp.float32):
    """Incidence matrix of the complete graph K_n: (n_nodes, n_nodes*(n_nodes-1)/2)."""
    edges = [(i, j) for i in range(n_nodes) for j in range(i + 1, n_nodes)]
    B = np.zeros((n_nodes, len(edges)), dtype=np.float32)
    for e, (i, j) in enumerate(edges):
        B[i, e] = 1.0
        B[j, e] = 1.0
    return jnp.asarray(B, dtype=dtype)


def reference(x, incidence):
    # Pure-JAX reference mirroring torch.einsum('bfn,nm->bfnm') + max over n.
    v = jnp.einsum("bfn,nm->bfnm", x, incidence)
    return jnp.max(v, axis=2)


if __name__ == "__main__":
    key = jax.random.PRNGKey(0)
    k_x, k_b = jax.random.split(key)

    batch, feats, n_nodes = 2, 4, 8                       # M = 8*7/2 = 28 edges
    incidence = make_clique_incidence(n_nodes)            # (8, 28), binary clique
    x = jax.random.normal(k_x, (batch, feats, n_nodes), dtype=jnp.float32)

    # 1) MXU fast path (binary two-per-column incidence).
    y = jax.block_until_ready(pool_clique_to_line(x, incidence))
    y_ref = reference(x, incidence)
    assert y.shape == (batch, feats, incidence.shape[1]), y.shape
    assert jnp.allclose(y, y_ref, atol=1e-5, rtol=1e-5), "MXU path mismatch vs reference"

    # 2) General VPU path forced on the same incidence.
    y_g = jax.block_until_ready(pool_clique_to_line(x, incidence, force_general=True))
    assert jnp.allclose(y_g, y_ref, atol=1e-6, rtol=1e-6), "general path mismatch"

    # 3) General path auto-selected for a weighted (non-binary) incidence.
    inc_w = jax.random.uniform(k_b, (n_nodes, 20), dtype=jnp.float32)
    y_w = jax.block_until_ready(pool_clique_to_line(x, inc_w))
    assert jnp.allclose(y_w, reference(x, inc_w), atol=1e-6, rtol=1e-6), "weighted mismatch"

    print("KERNEL_OK")
</pallas_src>

<mosaic_0001>
module attributes {stable_mosaic.version = 11 : i64} {
  func.func @_pool_mxu_kernel(%arg0: i32, %arg1: i32, %arg2: memref<8x8xf32, #tpu.memory_space<vmem>>, %arg3: memref<8x128xf32, #tpu.memory_space<vmem>>, %arg4: memref<8x128xf32, #tpu.memory_space<vmem>>, %arg5: memref<8x128xf32, #tpu.memory_space<vmem>>) attributes {dimension_semantics = [#tpu.dimension_semantics<parallel>, #tpu.dimension_semantics<parallel>], iteration_bounds = array<i64: 1, 1>, scalar_prefetch = 0 : i64, scratch_operands = 0 : i64, tpu.core_type = #tpu.core_type<tc>, window_params = [{transform_indices = @transform_0, window_bounds = array<i64: 8, 8>}, {transform_indices = @transform_1, window_bounds = array<i64: 8, 128>}, {transform_indices = @transform_2, window_bounds = array<i64: 8, 128>}, {transform_indices = @transform_3, window_bounds = array<i64: 8, 128>}]} {
    %c0 = arith.constant 0 : index
    %c0_0 = arith.constant 0 : index
    %0 = vector.load %arg2[%c0, %c0_0] : memref<8x8xf32, #tpu.memory_space<vmem>>, vector<8x8xf32>
    %c0_1 = arith.constant 0 : index
    %c0_2 = arith.constant 0 : index
    %1 = vector.load %arg3[%c0_1, %c0_2] : memref<8x128xf32, #tpu.memory_space<vmem>>, vector<8x128xf32>
    %cst = arith.constant dense<0.000000e+00> : vector<8x128xf32>
    %2 = tpu.matmul %0, %1, %cst {dimension_numbers = #tpu.dot_dimension_numbers<[1], [0], [0], [1], [0, 0, 1, 1], [], []>, precision = #tpu.contract_precision<fp32>} : vector<8x8xf32>, vector<8x128xf32>, vector<8x128xf32> -> vector<8x128xf32>
    %c0_3 = arith.constant 0 : index
    %c0_4 = arith.constant 0 : index
    %3 = vector.load %arg4[%c0_3, %c0_4] : memref<8x128xf32, #tpu.memory_space<vmem>>, vector<8x128xf32>
    %cst_5 = arith.constant dense<0.000000e+00> : vector<8x128xf32>
    %4 = tpu.matmul %0, %3, %cst_5 {dimension_numbers = #tpu.dot_dimension_numbers<[1], [0], [0], [1], [0, 0, 1, 1], [], []>, precision = #tpu.contract_precision<fp32>} : vector<8x8xf32>, vector<8x128xf32>, vector<8x128xf32> -> vector<8x128xf32>
    %5 = arith.maximumf %2, %4 : vector<8x128xf32>
    %cst_6 = arith.constant 0.000000e+00 : f32
    %6 = vector.broadcast %cst_6 : f32 to vector<8x128xf32>
    %7 = arith.maximumf %5, %6 : vector<8x128xf32>
    %c0_7 = arith.constant 0 : index
    %c0_8 = arith.constant 0 : index
    %8 = vector.load %arg5[%c0_7, %c0_8] : memref<8x128xf32, #tpu.memory_space<vmem>>, vector<8x128xf32>
    tpu.vector_store %arg5[%c0_7, %c0_8], %7 {strides = array<i32>} : memref<8x128xf32, #tpu.memory_space<vmem>>, vector<8x128xf32>,
    return
  }
  func.func @transform_0(%arg0: i32, %arg1: i32) -> (i32, i32) {
    %c0_i32 = arith.constant 0 : i32
    %c0_i32_0 = arith.constant 0 : i32
    return %arg0, %c0_i32 : i32, i32
  }
  func.func @transform_1(%arg0: i32, %arg1: i32) -> (i32, i32) {
    %c0_i32 = arith.constant 0 : i32
    %c0_i32_0 = arith.constant 0 : i32
    return %c0_i32, %arg1 : i32, i32
  }
  func.func @transform_2(%arg0: i32, %arg1: i32) -> (i32, i32) {
    %c0_i32 = arith.constant 0 : i32
    %c0_i32_0 = arith.constant 0 : i32
    return %c0_i32, %arg1 : i32, i32
  }
  func.func @transform_3(%arg0: i32, %arg1: i32) -> (i32, i32) {
    %c0_i32 = arith.constant 0 : i32
    return %arg0, %arg1 : i32, i32
  }
}

</mosaic_0001>

<bundles_post_ra>
// kernel: tpu_custom_call.1
= control target key start
LH: loop header
LB: loop body
LE: loop exit
PB: predicated region body
PF: predicated region fallthrough
CT: control target
= control target key end

     0   :  { %8 = vsyncpa [#allocation3], 0  ;;  %s518_s0 = inlined_call_operand.hbm [shape: f32[8,8], index: 0, kind: input, shape index: {}]   ;;  %s519_s1 = inlined_call_operand.hbm [shape: f32[8,128], index: 1, kind: input, shape index: {}]   ;;  %s520_s2 = inlined_call_operand.hbm [shape: f32[8,128], index: 2, kind: input, shape index: {}]   ;;  %s521_s3 = inlined_call_operand.hbm [shape: f32[8,128], index: 3, kind: output, shape index: {}]  }
   0x1   :  { %9 = vsyncpa [#allocation6], 0  ;;  %s27_s14 = sshll.u32 %s519_s1, 4  ;;  %s28_s14 = int_to_ptr.hbm [resolvable:$true] %s27_s14 }
   0x2   :  { %10 = vsyncpa [#allocation4], 0  ;;  %s482_s15 = smov [#allocation5]   ;;  %s16_s19 = sshll.u32 %s518_s0, 4  ;;  %s17_s19 = int_to_ptr.hbm [resolvable:$true] %s16_s19 }
   0x3   :  { %s29_s16 = sshll.u32 %s482_s15, 4  ;;  %s483_s20 = smov [#allocation2]   ;;  %s30_s16 = int_to_ptr.vmem [resolvable:$true] %s29_s16 }
   0x4   :  { %32 = dma.hbm_to_vmem [thread:$0]  %s28_s14, 128, %s30_s16, [#allocation6]  }
   0x5   :  { %s18_s21 = sshll.u32 %s483_s20, 4  ;;  %s38_s24 = sshll.u32 %s520_s2, 4  ;;  %s19_s21 = int_to_ptr.vmem [resolvable:$true] %s18_s21  ;;  %s39_s24 = int_to_ptr.hbm [resolvable:$true] %s38_s24 }
   0x6   :  { %21 = dma.hbm_to_vmem [thread:$0]  %s17_s19, 128, %s19_s21, [#allocation3]  }
   0x7   :  { %s484_s1 = smov [#allocation7]  }
   0x8   :  { %s40_s25 = sshll.u32 %s484_s1, 4  ;;  %s41_s25 = int_to_ptr.vmem [resolvable:$true] %s40_s25 }
   0x9   :  { %43 = dma.hbm_to_vmem [thread:$0]  %s39_s24, 128, %s41_s25, [#allocation6]  }
   0xa   :  { %476 = dma.done.wait [#allocation3], 128  }
   0xb   :  { %477 = vsyncadd [#allocation3], 4294967168 }
   0xc   :  { %478 = dma.done.wait [#allocation6], 256  }
   0xd   :  { %479 = vsyncadd [#allocation6], 4294967040  ;;  %vm58_vm0 = vcmask 64512   ;;  %v57_v0 = vld [vmem:[#allocation5] sm:$0xff]  ;;  %v56_v1 = vld [vmem:[#allocation2] sm:$0xff]  ;;  %s485_s0 = smov [#allocation8]  }
   0xe   :  { %v208_v2 = vld [vmem:[#allocation7] sm:$0xff]  ;;  %v77_v3 = vand.u32 4294901760, %v57_v0  ;;  %v60_v4 = vsel %vm58_vm0, %v56_v1, 0  ;;  %s363_s2 = sshll.u32 %s485_s0, 4  ;;  %s365_s28 = sshll.u32 %s521_s3, 4  ;;  %s364_s2 = int_to_ptr.vmem [resolvable:$true] %s363_s2  ;;  %s366_s28 = int_to_ptr.hbm [resolvable:$true] %s365_s28 }
   0xf   :  { %v224_v5 = vand.u32 4294901760, %v208_v2  ;;  %v79_v6 = vand.u32 4294901760, %v60_v4 }
  0x10   :  { %v104_v7 = vsub.f32 %v57_v0, %v77_v3  ;;  %154 = vmatpush.msra.mxu3 %v77_v3  ;;  %78 = vmatpush.msra.mxu0 %v77_v3 }
  0x11   :  { %v251_v8 = vsub.f32 %v208_v2, %v224_v5  ;;  %v80_v9 = vsub.f32 %v60_v4, %v79_v6 }
  0x12   :  { %131 = vmatpush.msra.mxu2 %v104_v7  ;;  %v105_v10 = vand.u32 4294901760, %v104_v7 }
  0x13   :  { %v252_v11 = vand.u32 4294901760, %v251_v8  ;;  %134 = vmatmul.f32.vlgmr.msra.gmra.mxu2 %v80_v9  ;;  %v81_v12 = vand.u32 4294901760, %v80_v9 }
  0x14   :  { %225 = vmatpush.msrb.mxu2 %v224_v5  ;;  %v106_v13 = vsub.f32 %v104_v7, %v105_v10  ;;  %180 = vmatpush.msrb.mxu0 %v105_v10 }
  0x15   :  { %v253_v14 = vsub.f32 %v251_v8, %v252_v11  ;;  %158 = vmatmul.f32.vlgmr.msra.gmra.mxu3 %v81_v12  ;;  %v82_v15 = vsub.f32 %v80_v9, %v81_v12 }
  0x16   :  { %327 = vmatpush.msra.mxu2 %v252_v11  ;;  %v107_v16 = vand.u32 4294901760, %v106_v13 }
  0x17   :  { %v254_v17 = vand.u32 4294901760, %v253_v14  ;;  %v83_v18 = vand.u32 4294901760, %v82_v15 }
  0x18   :  { %108 = vmatpush.msra.mxu1 %v107_v16 }
  0x19   :  { %255 = vmatpush.msrb.mxu3 %v254_v17  ;;  %84 = vmatmul.f32.vlgmr.msra.gmra.mxu0 %v83_v18 }
  0x1a   :  { %110 = vmatmul.f32.vlgmr.msra.gmra.mxu1 %v79_v6  ;;  %278 = vmatpush.msra.mxu0 %v251_v8 }
  0x1b   :  { %202 = vmatpush.msrb.mxu1 %v77_v3  ;;  %231 = vmatmul.f32.vlgmr.msrb.gmra.mxu2 %v83_v18 }
  0x1c   :  { %349 = vmatpush.msra.mxu3 %v224_v5 }
  0x1d   :  { %301 = vmatpush.msra.mxu1 %v224_v5  ;;  %257 = vmatmul.f32.vlgmr.msrb.gmra.mxu3 %v79_v6 }
  0x21   :  { %182 = vmatmul.f32.vlgmr.msrb.gmra.mxu0 %v79_v6 }
  0x22   :  { %204 = vmatmul.f32.vlgmr.msrb.gmra.mxu1 %v79_v6 }
  0x23   :  { %329 = vmatmul.f32.vlgmr.msra.gmra.mxu2 %v79_v6 }
  0x25   :  { %351 = vmatmul.f32.vlgmr.msra.gmra.mxu3 %v79_v6 }
  0x29   :  { %281 = vmatmul.f32.vlgmr.msra.gmra.mxu0 %v80_v9 }
  0x2a   :  { %305 = vmatmul.f32.vlgmr.msra.gmra.mxu1 %v81_v12 }
  0x96   :  { %v85_v19 = vpop.f32.mrf.mxu0  ;;  %v135_v21 = vpop.f32.mrf.mxu2 }
  0x97   :  { %v111_v20 = vpop.f32.mrf.mxu1 }
  0x98   :  { %v159_v22 = vpop.f32.mrf.mxu3  ;;  %v112_v25 = vadd.f32 %v111_v20, %v85_v19 }
  0x9a   :  { %v136_v28 = vadd.f32 %v135_v21, %v112_v25 }
  0x9c   :  { %v160_v32 = vadd.f32 %v159_v22, %v136_v28 }
  0x9e   :  { %v183_v23 = vpop.f32.mrf.mxu0  ;;  %v232_v26 = vpop.f32.mrf.mxu2 }
  0x9f   :  { %v205_v24 = vpop.f32.mrf.mxu1  ;;  %v184_v35 = vadd.f32 %v183_v23, %v160_v32 }
  0xa0   :  { %v258_v27 = vpop.f32.mrf.mxu3 }
  0xa1   :  { %v259_v29 = vadd.f32 %v258_v27, %v232_v26  ;;  %v206_v39 = vadd.f32 %v205_v24, %v184_v35 }
  0xa6   :  { %v282_v30 = vpop.f32.mrf.mxu0  ;;  %v330_v34 = vpop.f32.mrf.mxu2 }
  0xa7   :  { %v306_v31 = vpop.f32.mrf.mxu1  ;;  %v283_v33 = vadd.f32 %v282_v30, %v259_v29 }
  0xa8   :  { %v352_v37 = vpop.f32.mrf.mxu3 }
  0xa9   :  { %v307_v36 = vadd.f32 %v306_v31, %v283_v33 }
  0xab   :  { %v331_v38 = vadd.f32 %v330_v34, %v307_v36 }
  0xad   :  { %v353_v40 = vadd.f32 %v352_v37, %v331_v38 }
  0xaf   :  { %v355_v41 = vmax.f32 %v206_v39, %v353_v40 }
  0xb1   :  { %v356_v42 = vmax.f32 %v355_v41, 0.0 }
  0xb3   :  { %357 = vst [vmem:[#allocation8] sm:$0xff] %v356_v42 }
  0xb4   :  { %368 = dma.vmem_to_hbm [thread:$0]  %s364_s2, 128, %s366_s28, [#allocation4]  }
  0xb5   :  { %480 = dma.done.wait [#allocation4], 128  }
  0xb6   :  { %481 = vsyncadd [#allocation4], 4294967168 }
  0xb7   :  { %373 = vsyncpa [#allocation3], 1 }
  0xb8   :  { %374 = vsyncpa [#allocation6], 1 }
  0xb9   :  { %375 = vsyncpa [#allocation4], 1 }

</bundles_post_ra>
